<compile_context>
chip_gen: v7x
topology: tpu7x:2x2x1
jax: 0.10.0
libtpu: 0.0.40
codegen_flags: <defaults>
</compile_context>

<pallas_src>
import functools
import math

import jax
import jax.numpy as jnp
from jax.experimental import pallas as pl
from jax.experimental.pallas import tpu as pltpu

PAD = 128  # lane-dense padded width for packed gates / output


# ----------------------------------------------------------------------------
# Kernel
# ----------------------------------------------------------------------------
def _decoder_kernel(dec_ref, latlon_ref, wdx_ref, wdc_ref,
                    wih_ref, whh_ref, bias_ref, wout_ref, out_ref):
    """Grid-less; every operand lives fully in VMEM (total << 100 KiB).

    dec_ref    : (T*B, E)       time-major flattened decoder input
    latlon_ref : (B, LAT+LON)   concatenated maneuver encodings
    wdx_ref    : (E, H)         dec part of dec_linear weight
    wdc_ref    : (LAT+LON, H)   lat/lon part of dec_linear weight
    wih_ref    : (H, PAD)       packed GRU input weights  [W_ir|W_iz|W_in|0]
    whh_ref    : (H, PAD)       packed GRU hidden weights [W_hr|W_hz|W_hn|0]
    bias_ref   : (4, PAD)       row0: [b_dec|0]
                                row1: [b_ir+b_hr | b_iz+b_hz | b_in | 0]
                                row2: [0 | 0 | b_hn | 0]   (stays inside r*(.))
                                row3: [b_out|0]
    wout_ref   : (H, PAD)       zero-padded output projection
    out_ref    : (T*B, PAD)
    """
    TB, _ = dec_ref.shape
    B = latlon_ref.shape[0]
    H = whh_ref.shape[0]
    T = TB // B
    f32 = jnp.float32

    bias = bias_ref[...]                        # (4, PAD)
    b_dec = bias[0:1, :H]                       # (1, H)
    b_gate = bias[1:2, :]                       # (1, PAD)
    b_hn_row = bias[2:3, :]                     # (1, PAD)
    b_out = bias[3:4, :]                        # (1, PAD)

    # ---- dec_linear, hoisted; lat/lon term is constant over time ------------
    x_dec = jnp.dot(dec_ref[...], wdx_ref[...],
                    preferred_element_type=f32)                     # (T*B, H)
    c = jnp.dot(latlon_ref[...], wdc_ref[...],
                preferred_element_type=f32) + b_dec                 # (B, H)
    x_full = x_dec + jnp.concatenate([c] * T, axis=0)               # (T*B, H)

    # ---- all GRU input-gate projections in ONE 128-lane matmul --------------
    G = jnp.dot(x_full, wih_ref[...],
                preferred_element_type=f32) + b_gate                # (T*B, PAD)

    whh = whh_ref[...]

    # ---- recurrence: one packed matmul + gate math per step -----------------
    h = jnp.zeros((B, H), f32)
    hs = []
    for t in range(T):                          # T small & static -> unrolled
        lo = t * B
        gh = jnp.dot(h, whh, preferred_element_type=f32) + b_hn_row  # (B, PAD)
        g = G[lo:lo + B]
        # r|z adjacent in lanes 0:2H -> a single EUP tanh push for the sigmoid
        rz = 0.5 * (jnp.tanh(0.5 * (g[:, :2 * H] + gh[:, :2 * H])) + 1.0)
        r = rz[:, :H]
        z = rz[:, H:2 * H]
        n = jnp.tanh(g[:, 2 * H:3 * H] + r * gh[:, 2 * H:3 * H])
        h = (1.0 - z) * n + z * h
        hs.append(h)                            # stays in vregs

    # ---- output projection + activation, one lane-dense store ---------------
    hs_all = jnp.concatenate(hs, axis=0)                             # (T*B, H)
    fut = jnp.dot(hs_all, wout_ref[...],
                  preferred_element_type=f32) + b_out                # (T*B, PAD)
    col = jax.lax.broadcasted_iota(jnp.int32, fut.shape, 1)
    act = jnp.where(col < 2, fut,                       # muX, muY
                    jnp.where(col < 4, jnp.exp(fut),    # sigX, sigY
                              jnp.tanh(fut)))           # rho (pad lanes -> 0)
    out_ref[...] = act.astype(out_ref.dtype)


# ----------------------------------------------------------------------------
# One-time parameter packing (model-load time, NOT in the per-call path)
# ----------------------------------------------------------------------------
def prepare_params(params, pad=PAD):
    E = params["w_ih"].shape[0]
    H = E

    w_dec = params["w_dec"]
    wdx = w_dec[:E]                              # (E, H)
    wdc = w_dec[E:]                              # (LAT+LON, H)
    b_dec = params["b_dec"]                      # (1, H)

    w_ih, w_hh = params["w_ih"], params["w_hh"]
    b_ih, b_hh = params["b_ih"], params["b_hh"]
    wih_p = jnp.pad(w_ih, ((0, 0), (0, pad - 3 * H)))     # (H, PAD)
    whh_p = jnp.pad(w_hh, ((0, 0), (0, pad - 3 * H)))     # (H, PAD)

    # folded r/z biases; n-gate input bias; b_hn kept separate (inside r*(.))
    b_gate = jnp.concatenate(
        [b_ih[:, :2 * H] + b_hh[:, :2 * H], b_ih[:, 2 * H:]], axis=1)  # (1, 3H)
    b_gate = jnp.pad(b_gate, ((0, 0), (0, pad - 3 * H)))
    b_hn_row = jnp.pad(b_hh[:, 2 * H:], ((0, 0), (2 * H, pad - 3 * H)))

    w_out, b_out = params["w_out"], params["b_out"]
    out_dim = int(w_out.shape[1])
    wout_p = jnp.pad(w_out, ((0, 0), (0, pad - out_dim)))
    bout_p = jnp.pad(b_out, ((0, 0), (0, pad - out_dim)))
    b_dec_row = jnp.pad(b_dec, ((0, 0), (0, pad - H)))

    bias_block = jnp.concatenate(
        [b_dec_row, b_gate, b_hn_row, bout_p], axis=0)    # (4, PAD)

    packed = {
        "wdx": wdx, "wdc": wdc,
        "wih": wih_p, "whh": whh_p,
        "bias": bias_block, "wout": wout_p,
    }
    packed = jax.tree_util.tree_map(jax.device_put, packed)
    return packed, out_dim


# ----------------------------------------------------------------------------
# Per-call forward: reshape + concat + pallas_call + slice only
# ----------------------------------------------------------------------------
@functools.partial(jax.jit, static_argnames=("out_dim",))
def decoder_stu_forward(dec, lat_enc, lon_enc, packed, out_dim=5):
    T, B, E = dec.shape
    dec2 = dec.reshape(T * B, E)
    latlon = jnp.concatenate([lat_enc, lon_enc], axis=1)

    vmem = pl.BlockSpec(memory_space=pltpu.MemorySpace.VMEM)
    out = pl.pallas_call(
        _decoder_kernel,
        out_shape=jax.ShapeDtypeStruct((T * B, PAD), jnp.float32),
        in_specs=[vmem] * 8,
        out_specs=vmem,
    )(dec2, latlon, packed["wdx"], packed["wdc"],
      packed["wih"], packed["whh"], packed["bias"], packed["wout"])
    return out.reshape(T, B, PAD)[..., :out_dim]


# ----------------------------------------------------------------------------
# Deterministic parameter init (PyTorch-style uniform(-1/sqrt(fan), 1/sqrt(fan)))
# ----------------------------------------------------------------------------
def init_params(key, encoder_size, lat_length, lon_length, out_dim=5):
    E = encoder_size
    Din = E + lat_length + lon_length
    ks = jax.random.split(key, 9)

    def u(k, shape, fan):
        bound = 1.0 / math.sqrt(fan)
        return jax.random.uniform(k, shape, jnp.float32, -bound, bound)

    return {
        "w_dec": u(ks[0], (Din, E), Din),
        "b_dec": u(ks[1], (1, E), Din),
        "w_ih":  u(ks[2], (E, 3 * E), E),
        "w_hh":  u(ks[3], (E, 3 * E), E),
        "b_ih":  u(ks[4], (1, 3 * E), E),
        "b_hh":  u(ks[5], (1, 3 * E), E),
        "w_out": u(ks[6], (E, out_dim), E),
        "b_out": u(ks[7], (1, out_dim), E),
    }


# ----------------------------------------------------------------------------
# Pure-JAX reference (mirrors the PyTorch forward) for a correctness check
# ----------------------------------------------------------------------------
def reference_forward(dec, lat_enc, lon_enc, p):
    T, B, E = dec.shape
    H = E
    lat_rep = jnp.broadcast_to(lat_enc[None], (T,) + lat_enc.shape)
    lon_rep = jnp.broadcast_to(lon_enc[None], (T,) + lon_enc.shape)
    x = jnp.concatenate([dec, lat_rep, lon_rep], -1)
    x = x @ p["w_dec"] + p["b_dec"]

    def step(h, xt):
        gx = xt @ p["w_ih"] + p["b_ih"]
        gh = h @ p["w_hh"] + p["b_hh"]
        r = jax.nn.sigmoid(gx[:, :H] + gh[:, :H])
        z = jax.nn.sigmoid(gx[:, H:2 * H] + gh[:, H:2 * H])
        n = jnp.tanh(gx[:, 2 * H:] + r * gh[:, 2 * H:])
        h_new = (1.0 - z) * n + z * h
        return h_new, h_new

    h0 = jnp.zeros((B, H), jnp.float32)
    _, hs = jax.lax.scan(step, h0, x)
    fut = hs @ p["w_out"] + p["b_out"]
    return jnp.concatenate(
        [fut[..., 0:2], jnp.exp(fut[..., 2:4]), jnp.tanh(fut[..., 4:5])], -1)


# ----------------------------------------------------------------------------
if __name__ == "__main__":
    # Small shapes consistent with the module:
    # out_length=8, batch=2, lstm_encoder_size=32, lat_length=3, lon_length=2
    T, B, E = 8, 2, 32
    LAT, LON = 3, 2

    key = jax.random.PRNGKey(0)
    k_dec, k_lat, k_lon, k_param = jax.random.split(key, 4)

    dec = jax.random.normal(k_dec, (T, B, E), jnp.float32)      # (out_length, batch, enc)
    lat_enc = jax.random.normal(k_lat, (B, LAT), jnp.float32)   # (batch, lat_length)
    lon_enc = jax.random.normal(k_lon, (B, LON), jnp.float32)   # (batch, lon_length)

    params = init_params(k_param, E, LAT, LON)
    packed, out_dim = prepare_params(params)   # one-time, at "model load"

    out = decoder_stu_forward(dec, lat_enc, lon_enc, packed, out_dim=out_dim)
    out = jax.block_until_ready(out)

    ref = reference_forward(dec, lat_enc, lon_enc, params)
    assert out.shape == (T, B, 5)
    assert jnp.allclose(out, ref, rtol=1e-4, atol=1e-4), "mismatch vs reference"

    print("KERNEL_OK")
</pallas_src>

<mosaic_0001>
module attributes {stable_mosaic.version = 11 : i64} {
  func.func @_decoder_kernel(%arg0: memref<16x32xf32, #tpu.memory_space<vmem>>, %arg1: memref<2x5xf32, #tpu.memory_space<vmem>>, %arg2: memref<32x32xf32, #tpu.memory_space<vmem>>, %arg3: memref<5x32xf32, #tpu.memory_space<vmem>>, %arg4: memref<32x128xf32, #tpu.memory_space<vmem>>, %arg5: memref<32x128xf32, #tpu.memory_space<vmem>>, %arg6: memref<4x128xf32, #tpu.memory_space<vmem>>, %arg7: memref<32x128xf32, #tpu.memory_space<vmem>>, %arg8: memref<16x128xf32, #tpu.memory_space<vmem>>) attributes {dimension_semantics = [], scalar_prefetch = 0 : i64, scratch_operands = 0 : i64, tpu.core_type = #tpu.core_type<tc>} {
    %c0 = arith.constant 0 : index
    %c0_0 = arith.constant 0 : index
    %0 = vector.load %arg6[%c0, %c0_0] : memref<4x128xf32, #tpu.memory_space<vmem>>, vector<4x128xf32>
    %1 = vector.extract_strided_slice %0 {offsets = [0, 0], sizes = [1, 32], strides = [1, 1]} : vector<4x128xf32> to vector<1x32xf32>
    %2 = vector.extract_strided_slice %0 {offsets = [1, 0], sizes = [1, 128], strides = [1, 1]} : vector<4x128xf32> to vector<1x128xf32>
    %3 = vector.extract_strided_slice %0 {offsets = [2, 0], sizes = [1, 128], strides = [1, 1]} : vector<4x128xf32> to vector<1x128xf32>
    %4 = vector.extract_strided_slice %0 {offsets = [3, 0], sizes = [1, 128], strides = [1, 1]} : vector<4x128xf32> to vector<1x128xf32>
    %c0_1 = arith.constant 0 : index
    %c0_2 = arith.constant 0 : index
    %5 = vector.load %arg0[%c0_1, %c0_2] : memref<16x32xf32, #tpu.memory_space<vmem>>, vector<16x32xf32>
    %c0_3 = arith.constant 0 : index
    %c0_4 = arith.constant 0 : index
    %6 = vector.load %arg2[%c0_3, %c0_4] : memref<32x32xf32, #tpu.memory_space<vmem>>, vector<32x32xf32>
    %cst = arith.constant dense<0.000000e+00> : vector<16x32xf32>
    %7 = tpu.matmul %5, %6, %cst {dimension_numbers = #tpu.dot_dimension_numbers<[1], [0], [0], [1], [0, 0, 1, 1], [], []>} : vector<16x32xf32>, vector<32x32xf32>, vector<16x32xf32> -> vector<16x32xf32>
    %c0_5 = arith.constant 0 : index
    %c0_6 = arith.constant 0 : index
    %8 = vector.load %arg1[%c0_5, %c0_6] : memref<2x5xf32, #tpu.memory_space<vmem>>, vector<2x5xf32>
    %c0_7 = arith.constant 0 : index
    %c0_8 = arith.constant 0 : index
    %9 = vector.load %arg3[%c0_7, %c0_8] : memref<5x32xf32, #tpu.memory_space<vmem>>, vector<5x32xf32>
    %cst_9 = arith.constant dense<0.000000e+00> : vector<2x32xf32>
    %10 = tpu.matmul %8, %9, %cst_9 {dimension_numbers = #tpu.dot_dimension_numbers<[1], [0], [0], [1], [0, 0, 1, 1], [], []>} : vector<2x5xf32>, vector<5x32xf32>, vector<2x32xf32> -> vector<2x32xf32>
    %11 = vector.broadcast %1 : vector<1x32xf32> to vector<2x32xf32>
    %12 = arith.addf %10, %11 : vector<2x32xf32>
    %13 = tpu.concatenate %12, %12, %12, %12, %12, %12, %12, %12 in 0 : vector<2x32xf32>, vector<2x32xf32>, vector<2x32xf32>, vector<2x32xf32>, vector<2x32xf32>, vector<2x32xf32>, vector<2x32xf32>, vector<2x32xf32> -> vector<16x32xf32>
    %14 = arith.addf %7, %13 : vector<16x32xf32>
    %c0_10 = arith.constant 0 : index
    %c0_11 = arith.constant 0 : index
    %15 = vector.load %arg4[%c0_10, %c0_11] : memref<32x128xf32, #tpu.memory_space<vmem>>, vector<32x128xf32>
    %cst_12 = arith.constant dense<0.000000e+00> : vector<16x128xf32>
    %16 = tpu.matmul %14, %15, %cst_12 {dimension_numbers = #tpu.dot_dimension_numbers<[1], [0], [0], [1], [0, 0, 1, 1], [], []>} : vector<16x32xf32>, vector<32x128xf32>, vector<16x128xf32> -> vector<16x128xf32>
    %17 = vector.broadcast %2 : vector<1x128xf32> to vector<16x128xf32>
    %18 = arith.addf %16, %17 : vector<16x128xf32>
    %c0_13 = arith.constant 0 : index
    %c0_14 = arith.constant 0 : index
    %19 = vector.load %arg5[%c0_13, %c0_14] : memref<32x128xf32, #tpu.memory_space<vmem>>, vector<32x128xf32>
    %cst_15 = arith.constant 0.000000e+00 : f32
    %20 = vector.broadcast %cst_15 : f32 to vector<2x32xf32>
    %cst_16 = arith.constant dense<0.000000e+00> : vector<2x128xf32>
    %21 = tpu.matmul %20, %19, %cst_16 {dimension_numbers = #tpu.dot_dimension_numbers<[1], [0], [0], [1], [0, 0, 1, 1], [], []>} : vector<2x32xf32>, vector<32x128xf32>, vector<2x128xf32> -> vector<2x128xf32>
    %22 = vector.broadcast %3 : vector<1x128xf32> to vector<2x128xf32>
    %23 = arith.addf %21, %22 : vector<2x128xf32>
    %24 = vector.extract_strided_slice %18 {offsets = [0, 0], sizes = [2, 128], strides = [1, 1]} : vector<16x128xf32> to vector<2x128xf32>
    %25 = vector.extract_strided_slice %24 {offsets = [0, 0], sizes = [2, 64], strides = [1, 1]} : vector<2x128xf32> to vector<2x64xf32>
    %26 = vector.extract_strided_slice %23 {offsets = [0, 0], sizes = [2, 64], strides = [1, 1]} : vector<2x128xf32> to vector<2x64xf32>
    %27 = arith.addf %25, %26 : vector<2x64xf32>
    %cst_17 = arith.constant 5.000000e-01 : f32
    %28 = vector.broadcast %cst_17 : f32 to vector<2x64xf32>
    %29 = arith.mulf %28, %27 : vector<2x64xf32>
    %30 = math.tanh %29 : vector<2x64xf32>
    %cst_18 = arith.constant 1.000000e+00 : f32
    %31 = vector.broadcast %cst_18 : f32 to vector<2x64xf32>
    %32 = arith.addf %30, %31 : vector<2x64xf32>
    %cst_19 = arith.constant 5.000000e-01 : f32
    %33 = vector.broadcast %cst_19 : f32 to vector<2x64xf32>
    %34 = arith.mulf %33, %32 : vector<2x64xf32>
    %35 = vector.extract_strided_slice %34 {offsets = [0, 0], sizes = [2, 32], strides = [1, 1]} : vector<2x64xf32> to vector<2x32xf32>
    %36 = vector.extract_strided_slice %34 {offsets = [0, 32], sizes = [2, 32], strides = [1, 1]} : vector<2x64xf32> to vector<2x32xf32>
    %37 = vector.extract_strided_slice %24 {offsets = [0, 64], sizes = [2, 32], strides = [1, 1]} : vector<2x128xf32> to vector<2x32xf32>
    %38 = vector.extract_strided_slice %23 {offsets = [0, 64], sizes = [2, 32], strides = [1, 1]} : vector<2x128xf32> to vector<2x32xf32>
    %39 = arith.mulf %35, %38 : vector<2x32xf32>
    %40 = arith.addf %37, %39 : vector<2x32xf32>
    %41 = math.tanh %40 : vector<2x32xf32>
    %cst_20 = arith.constant 1.000000e+00 : f32
    %42 = vector.broadcast %cst_20 : f32 to vector<2x32xf32>
    %43 = arith.subf %42, %36 : vector<2x32xf32>
    %44 = arith.mulf %43, %41 : vector<2x32xf32>
    %45 = arith.mulf %36, %20 : vector<2x32xf32>
    %46 = arith.addf %44, %45 : vector<2x32xf32>
    %cst_21 = arith.constant dense<0.000000e+00> : vector<2x128xf32>
    %47 = tpu.matmul %46, %19, %cst_21 {dimension_numbers = #tpu.dot_dimension_numbers<[1], [0], [0], [1], [0, 0, 1, 1], [], []>} : vector<2x32xf32>, vector<32x128xf32>, vector<2x128xf32> -> vector<2x128xf32>
    %48 = vector.broadcast %3 : vector<1x128xf32> to vector<2x128xf32>
    %49 = arith.addf %47, %48 : vector<2x128xf32>
    %50 = vector.extract_strided_slice %18 {offsets = [2, 0], sizes = [2, 128], strides = [1, 1]} : vector<16x128xf32> to vector<2x128xf32>
    %51 = vector.extract_strided_slice %50 {offsets = [0, 0], sizes = [2, 64], strides = [1, 1]} : vector<2x128xf32> to vector<2x64xf32>
    %52 = vector.extract_strided_slice %49 {offsets = [0, 0], sizes = [2, 64], strides = [1, 1]} : vector<2x128xf32> to vector<2x64xf32>
    %53 = arith.addf %51, %52 : vector<2x64xf32>
    %cst_22 = arith.constant 5.000000e-01 : f32
    %54 = vector.broadcast %cst_22 : f32 to vector<2x64xf32>
    %55 = arith.mulf %54, %53 : vector<2x64xf32>
    %56 = math.tanh %55 : vector<2x64xf32>
    %cst_23 = arith.constant 1.000000e+00 : f32
    %57 = vector.broadcast %cst_23 : f32 to vector<2x64xf32>
    %58 = arith.addf %56, %57 : vector<2x64xf32>
    %cst_24 = arith.constant 5.000000e-01 : f32
    %59 = vector.broadcast %cst_24 : f32 to vector<2x64xf32>
    %60 = arith.mulf %59, %58 : vector<2x64xf32>
    %61 = vector.extract_strided_slice %60 {offsets = [0, 0], sizes = [2, 32], strides = [1, 1]} : vector<2x64xf32> to vector<2x32xf32>
    %62 = vector.extract_strided_slice %60 {offsets = [0, 32], sizes = [2, 32], strides = [1, 1]} : vector<2x64xf32> to vector<2x32xf32>
    %63 = vector.extract_strided_slice %50 {offsets = [0, 64], sizes = [2, 32], strides = [1, 1]} : vector<2x128xf32> to vector<2x32xf32>
    %64 = vector.extract_strided_slice %49 {offsets = [0, 64], sizes = [2, 32], strides = [1, 1]} : vector<2x128xf32> to vector<2x32xf32>
    %65 = arith.mulf %61, %64 : vector<2x32xf32>
    %66 = arith.addf %63, %65 : vector<2x32xf32>
    %67 = math.tanh %66 : vector<2x32xf32>
    %cst_25 = arith.constant 1.000000e+00 : f32
    %68 = vector.broadcast %cst_25 : f32 to vector<2x32xf32>
    %69 = arith.subf %68, %62 : vector<2x32xf32>
    %70 = arith.mulf %69, %67 : vector<2x32xf32>
    %71 = arith.mulf %62, %46 : vector<2x32xf32>
    %72 = arith.addf %70, %71 : vector<2x32xf32>
    %cst_26 = arith.constant dense<0.000000e+00> : vector<2x128xf32>
    %73 = tpu.matmul %72, %19, %cst_26 {dimension_numbers = #tpu.dot_dimension_numbers<[1], [0], [0], [1], [0, 0, 1, 1], [], []>} : vector<2x32xf32>, vector<32x128xf32>, vector<2x128xf32> -> vector<2x128xf32>
    %74 = vector.broadcast %3 : vector<1x128xf32> to vector<2x128xf32>
    %75 = arith.addf %73, %74 : vector<2x128xf32>
    %76 = vector.extract_strided_slice %18 {offsets = [4, 0], sizes = [2, 128], strides = [1, 1]} : vector<16x128xf32> to vector<2x128xf32>
    %77 = vector.extract_strided_slice %76 {offsets = [0, 0], sizes = [2, 64], strides = [1, 1]} : vector<2x128xf32> to vector<2x64xf32>
    %78 = vector.extract_strided_slice %75 {offsets = [0, 0], sizes = [2, 64], strides = [1, 1]} : vector<2x128xf32> to vector<2x64xf32>
    %79 = arith.addf %77, %78 : vector<2x64xf32>
    %cst_27 = arith.constant 5.000000e-01 : f32
    %80 = vector.broadcast %cst_27 : f32 to vector<2x64xf32>
    %81 = arith.mulf %80, %79 : vector<2x64xf32>
    %82 = math.tanh %81 : vector<2x64xf32>
    %cst_28 = arith.constant 1.000000e+00 : f32
    %83 = vector.broadcast %cst_28 : f32 to vector<2x64xf32>
    %84 = arith.addf %82, %83 : vector<2x64xf32>
    %cst_29 = arith.constant 5.000000e-01 : f32
    %85 = vector.broadcast %cst_29 : f32 to vector<2x64xf32>
    %86 = arith.mulf %85, %84 : vector<2x64xf32>
    %87 = vector.extract_strided_slice %86 {offsets = [0, 0], sizes = [2, 32], strides = [1, 1]} : vector<2x64xf32> to vector<2x32xf32>
    %88 = vector.extract_strided_slice %86 {offsets = [0, 32], sizes = [2, 32], strides = [1, 1]} : vector<2x64xf32> to vector<2x32xf32>
    %89 = vector.extract_strided_slice %76 {offsets = [0, 64], sizes = [2, 32], strides = [1, 1]} : vector<2x128xf32> to vector<2x32xf32>
    %90 = vector.extract_strided_slice %75 {offsets = [0, 64], sizes = [2, 32], strides = [1, 1]} : vector<2x128xf32> to vector<2x32xf32>
    %91 = arith.mulf %87, %90 : vector<2x32xf32>
    %92 = arith.addf %89, %91 : vector<2x32xf32>
    %93 = math.tanh %92 : vector<2x32xf32>
    %cst_30 = arith.constant 1.000000e+00 : f32
    %94 = vector.broadcast %cst_30 : f32 to vector<2x32xf32>
    %95 = arith.subf %94, %88 : vector<2x32xf32>
    %96 = arith.mulf %95, %93 : vector<2x32xf32>
    %97 = arith.mulf %88, %72 : vector<2x32xf32>
    %98 = arith.addf %96, %97 : vector<2x32xf32>
    %cst_31 = arith.constant dense<0.000000e+00> : vector<2x128xf32>
    %99 = tpu.matmul %98, %19, %cst_31 {dimension_numbers = #tpu.dot_dimension_numbers<[1], [0], [0], [1], [0, 0, 1, 1], [], []>} : vector<2x32xf32>, vector<32x128xf32>, vector<2x128xf32> -> vector<2x128xf32>
    %100 = vector.broadcast %3 : vector<1x128xf32> to vector<2x128xf32>
    %101 = arith.addf %99, %100 : vector<2x128xf32>
    %102 = vector.extract_strided_slice %18 {offsets = [6, 0], sizes = [2, 128], strides = [1, 1]} : vector<16x128xf32> to vector<2x128xf32>
    %103 = vector.extract_strided_slice %102 {offsets = [0, 0], sizes = [2, 64], strides = [1, 1]} : vector<2x128xf32> to vector<2x64xf32>
    %104 = vector.extract_strided_slice %101 {offsets = [0, 0], sizes = [2, 64], strides = [1, 1]} : vector<2x128xf32> to vector<2x64xf32>
    %105 = arith.addf %103, %104 : vector<2x64xf32>
    %cst_32 = arith.constant 5.000000e-01 : f32
    %106 = vector.broadcast %cst_32 : f32 to vector<2x64xf32>
    %107 = arith.mulf %106, %105 : vector<2x64xf32>
    %108 = math.tanh %107 : vector<2x64xf32>
    %cst_33 = arith.constant 1.000000e+00 : f32
    %109 = vector.broadcast %cst_33 : f32 to vector<2x64xf32>
    %110 = arith.addf %108, %109 : vector<2x64xf32>
    %cst_34 = arith.constant 5.000000e-01 : f32
    %111 = vector.broadcast %cst_34 : f32 to vector<2x64xf32>
    %112 = arith.mulf %111, %110 : vector<2x64xf32>
    %113 = vector.extract_strided_slice %112 {offsets = [0, 0], sizes = [2, 32], strides = [1, 1]} : vector<2x64xf32> to vector<2x32xf32>
    %114 = vector.extract_strided_slice %112 {offsets = [0, 32], sizes = [2, 32], strides = [1, 1]} : vector<2x64xf32> to vector<2x32xf32>
    %115 = vector.extract_strided_slice %102 {offsets = [0, 64], sizes = [2, 32], strides = [1, 1]} : vector<2x128xf32> to vector<2x32xf32>
    %116 = vector.extract_strided_slice %101 {offsets = [0, 64], sizes = [2, 32], strides = [1, 1]} : vector<2x128xf32> to vector<2x32xf32>
    %117 = arith.mulf %113, %116 : vector<2x32xf32>
    %118 = arith.addf %115, %117 : vector<2x32xf32>
    %119 = math.tanh %118 : vector<2x32xf32>
    %cst_35 = arith.constant 1.000000e+00 : f32
    %120 = vector.broadcast %cst_35 : f32 to vector<2x32xf32>
    %121 = arith.subf %120, %114 : vector<2x32xf32>
    %122 = arith.mulf %121, %119 : vector<2x32xf32>
    %123 = arith.mulf %114, %98 : vector<2x32xf32>
    %124 = arith.addf %122, %123 : vector<2x32xf32>
    %cst_36 = arith.constant dense<0.000000e+00> : vector<2x128xf32>
    %125 = tpu.matmul %124, %19, %cst_36 {dimension_numbers = #tpu.dot_dimension_numbers<[1], [0], [0], [1], [0, 0, 1, 1], [], []>} : vector<2x32xf32>, vector<32x128xf32>, vector<2x128xf32> -> vector<2x128xf32>
    %126 = vector.broadcast %3 : vector<1x128xf32> to vector<2x128xf32>
    %127 = arith.addf %125, %126 : vector<2x128xf32>
    %128 = vector.extract_strided_slice %18 {offsets = [8, 0], sizes = [2, 128], strides = [1, 1]} : vector<16x128xf32> to vector<2x128xf32>
    %129 = vector.extract_strided_slice %128 {offsets = [0, 0], sizes = [2, 64], strides = [1, 1]} : vector<2x128xf32> to vector<2x64xf32>
    %130 = vector.extract_strided_slice %127 {offsets = [0, 0], sizes = [2, 64], strides = [1, 1]} : vector<2x128xf32> to vector<2x64xf32>
    %131 = arith.addf %129, %130 : vector<2x64xf32>
    %cst_37 = arith.constant 5.000000e-01 : f32
    %132 = vector.broadcast %cst_37 : f32 to vector<2x64xf32>
    %133 = arith.mulf %132, %131 : vector<2x64xf32>
    %134 = math.tanh %133 : vector<2x64xf32>
    %cst_38 = arith.constant 1.000000e+00 : f32
    %135 = vector.broadcast %cst_38 : f32 to vector<2x64xf32>
    %136 = arith.addf %134, %135 : vector<2x64xf32>
    %cst_39 = arith.constant 5.000000e-01 : f32
    %137 = vector.broadcast %cst_39 : f32 to vector<2x64xf32>
    %138 = arith.mulf %137, %136 : vector<2x64xf32>
    %139 = vector.extract_strided_slice %138 {offsets = [0, 0], sizes = [2, 32], strides = [1, 1]} : vector<2x64xf32> to vector<2x32xf32>
    %140 = vector.extract_strided_slice %138 {offsets = [0, 32], sizes = [2, 32], strides = [1, 1]} : vector<2x64xf32> to vector<2x32xf32>
    %141 = vector.extract_strided_slice %128 {offsets = [0, 64], sizes = [2, 32], strides = [1, 1]} : vector<2x128xf32> to vector<2x32xf32>
    %142 = vector.extract_strided_slice %127 {offsets = [0, 64], sizes = [2, 32], strides = [1, 1]} : vector<2x128xf32> to vector<2x32xf32>
    %143 = arith.mulf %139, %142 : vector<2x32xf32>
    %144 = arith.addf %141, %143 : vector<2x32xf32>
    %145 = math.tanh %144 : vector<2x32xf32>
    %cst_40 = arith.constant 1.000000e+00 : f32
    %146 = vector.broadcast %cst_40 : f32 to vector<2x32xf32>
    %147 = arith.subf %146, %140 : vector<2x32xf32>
    %148 = arith.mulf %147, %145 : vector<2x32xf32>
    %149 = arith.mulf %140, %124 : vector<2x32xf32>
    %150 = arith.addf %148, %149 : vector<2x32xf32>
    %cst_41 = arith.constant dense<0.000000e+00> : vector<2x128xf32>
    %151 = tpu.matmul %150, %19, %cst_41 {dimension_numbers = #tpu.dot_dimension_numbers<[1], [0], [0], [1], [0, 0, 1, 1], [], []>} : vector<2x32xf32>, vector<32x128xf32>, vector<2x128xf32> -> vector<2x128xf32>
    %152 = vector.broadcast %3 : vector<1x128xf32> to vector<2x128xf32>
    %153 = arith.addf %151, %152 : vector<2x128xf32>
    %154 = vector.extract_strided_slice %18 {offsets = [10, 0], sizes = [2, 128], strides = [1, 1]} : vector<16x128xf32> to vector<2x128xf32>
    %155 = vector.extract_strided_slice %154 {offsets = [0, 0], sizes = [2, 64], strides = [1, 1]} : vector<2x128xf32> to vector<2x64xf32>
    %156 = vector.extract_strided_slice %153 {offsets = [0, 0], sizes = [2, 64], strides = [1, 1]} : vector<2x128xf32> to vector<2x64xf32>
    %157 = arith.addf %155, %156 : vector<2x64xf32>
    %cst_42 = arith.constant 5.000000e-01 : f32
    %158 = vector.broadcast %cst_42 : f32 to vector<2x64xf32>
    %159 = arith.mulf %158, %157 : vector<2x64xf32>
    %160 = math.tanh %159 : vector<2x64xf32>
    %cst_43 = arith.constant 1.000000e+00 : f32
    %161 = vector.broadcast %cst_43 : f32 to vector<2x64xf32>
    %162 = arith.addf %160, %161 : vector<2x64xf32>
    %cst_44 = arith.constant 5.000000e-01 : f32
    %163 = vector.broadcast %cst_44 : f32 to vector<2x64xf32>
    %164 = arith.mulf %163, %162 : vector<2x64xf32>
    %165 = vector.extract_strided_slice %164 {offsets = [0, 0], sizes = [2, 32], strides = [1, 1]} : vector<2x64xf32> to vector<2x32xf32>
    %166 = vector.extract_strided_slice %164 {offsets = [0, 32], sizes = [2, 32], strides = [1, 1]} : vector<2x64xf32> to vector<2x32xf32>
    %167 = vector.extract_strided_slice %154 {offsets = [0, 64], sizes = [2, 32], strides = [1, 1]} : vector<2x128xf32> to vector<2x32xf32>
    %168 = vector.extract_strided_slice %153 {offsets = [0, 64], sizes = [2, 32], strides = [1, 1]} : vector<2x128xf32> to vector<2x32xf32>
    %169 = arith.mulf %165, %168 : vector<2x32xf32>
    %170 = arith.addf %167, %169 : vector<2x32xf32>
    %171 = math.tanh %170 : vector<2x32xf32>
    %cst_45 = arith.constant 1.000000e+00 : f32
    %172 = vector.broadcast %cst_45 : f32 to vector<2x32xf32>
    %173 = arith.subf %172, %166 : vector<2x32xf32>
    %174 = arith.mulf %173, %171 : vector<2x32xf32>
    %175 = arith.mulf %166, %150 : vector<2x32xf32>
    %176 = arith.addf %174, %175 : vector<2x32xf32>
    %cst_46 = arith.constant dense<0.000000e+00> : vector<2x128xf32>
    %177 = tpu.matmul %176, %19, %cst_46 {dimension_numbers = #tpu.dot_dimension_numbers<[1], [0], [0], [1], [0, 0, 1, 1], [], []>} : vector<2x32xf32>, vector<32x128xf32>, vector<2x128xf32> -> vector<2x128xf32>
    %178 = vector.broadcast %3 : vector<1x128xf32> to vector<2x128xf32>
    %179 = arith.addf %177, %178 : vector<2x128xf32>
    %180 = vector.extract_strided_slice %18 {offsets = [12, 0], sizes = [2, 128], strides = [1, 1]} : vector<16x128xf32> to vector<2x128xf32>
    %181 = vector.extract_strided_slice %180 {offsets = [0, 0], sizes = [2, 64], strides = [1, 1]} : vector<2x128xf32> to vector<2x64xf32>
    %182 = vector.extract_strided_slice %179 {offsets = [0, 0], sizes = [2, 64], strides = [1, 1]} : vector<2x128xf32> to vector<2x64xf32>
    %183 = arith.addf %181, %182 : vector<2x64xf32>
    %cst_47 = arith.constant 5.000000e-01 : f32
    %184 = vector.broadcast %cst_47 : f32 to vector<2x64xf32>
    %185 = arith.mulf %184, %183 : vector<2x64xf32>
    %186 = math.tanh %185 : vector<2x64xf32>
    %cst_48 = arith.constant 1.000000e+00 : f32
    %187 = vector.broadcast %cst_48 : f32 to vector<2x64xf32>
    %188 = arith.addf %186, %187 : vector<2x64xf32>
    %cst_49 = arith.constant 5.000000e-01 : f32
    %189 = vector.broadcast %cst_49 : f32 to vector<2x64xf32>
    %190 = arith.mulf %189, %188 : vector<2x64xf32>
    %191 = vector.extract_strided_slice %190 {offsets = [0, 0], sizes = [2, 32], strides = [1, 1]} : vector<2x64xf32> to vector<2x32xf32>
    %192 = vector.extract_strided_slice %190 {offsets = [0, 32], sizes = [2, 32], strides = [1, 1]} : vector<2x64xf32> to vector<2x32xf32>
    %193 = vector.extract_strided_slice %180 {offsets = [0, 64], sizes = [2, 32], strides = [1, 1]} : vector<2x128xf32> to vector<2x32xf32>
    %194 = vector.extract_strided_slice %179 {offsets = [0, 64], sizes = [2, 32], strides = [1, 1]} : vector<2x128xf32> to vector<2x32xf32>
    %195 = arith.mulf %191, %194 : vector<2x32xf32>
    %196 = arith.addf %193, %195 : vector<2x32xf32>
    %197 = math.tanh %196 : vector<2x32xf32>
    %cst_50 = arith.constant 1.000000e+00 : f32
    %198 = vector.broadcast %cst_50 : f32 to vector<2x32xf32>
    %199 = arith.subf %198, %192 : vector<2x32xf32>
    %200 = arith.mulf %199, %197 : vector<2x32xf32>
    %201 = arith.mulf %192, %176 : vector<2x32xf32>
    %202 = arith.addf %200, %201 : vector<2x32xf32>
    %cst_51 = arith.constant dense<0.000000e+00> : vector<2x128xf32>
    %203 = tpu.matmul %202, %19, %cst_51 {dimension_numbers = #tpu.dot_dimension_numbers<[1], [0], [0], [1], [0, 0, 1, 1], [], []>} : vector<2x32xf32>, vector<32x128xf32>, vector<2x128xf32> -> vector<2x128xf32>
    %204 = vector.broadcast %3 : vector<1x128xf32> to vector<2x128xf32>
    %205 = arith.addf %203, %204 : vector<2x128xf32>
    %206 = vector.extract_strided_slice %18 {offsets = [14, 0], sizes = [2, 128], strides = [1, 1]} : vector<16x128xf32> to vector<2x128xf32>
    %207 = vector.extract_strided_slice %206 {offsets = [0, 0], sizes = [2, 64], strides = [1, 1]} : vector<2x128xf32> to vector<2x64xf32>
    %208 = vector.extract_strided_slice %205 {offsets = [0, 0], sizes = [2, 64], strides = [1, 1]} : vector<2x128xf32> to vector<2x64xf32>
    %209 = arith.addf %207, %208 : vector<2x64xf32>
    %cst_52 = arith.constant 5.000000e-01 : f32
    %210 = vector.broadcast %cst_52 : f32 to vector<2x64xf32>
    %211 = arith.mulf %210, %209 : vector<2x64xf32>
    %212 = math.tanh %211 : vector<2x64xf32>
    %cst_53 = arith.constant 1.000000e+00 : f32
    %213 = vector.broadcast %cst_53 : f32 to vector<2x64xf32>
    %214 = arith.addf %212, %213 : vector<2x64xf32>
    %cst_54 = arith.constant 5.000000e-01 : f32
    %215 = vector.broadcast %cst_54 : f32 to vector<2x64xf32>
    %216 = arith.mulf %215, %214 : vector<2x64xf32>
    %217 = vector.extract_strided_slice %216 {offsets = [0, 0], sizes = [2, 32], strides = [1, 1]} : vector<2x64xf32> to vector<2x32xf32>
    %218 = vector.extract_strided_slice %216 {offsets = [0, 32], sizes = [2, 32], strides = [1, 1]} : vector<2x64xf32> to vector<2x32xf32>
    %219 = vector.extract_strided_slice %206 {offsets = [0, 64], sizes = [2, 32], strides = [1, 1]} : vector<2x128xf32> to vector<2x32xf32>
    %220 = vector.extract_strided_slice %205 {offsets = [0, 64], sizes = [2, 32], strides = [1, 1]} : vector<2x128xf32> to vector<2x32xf32>
    %221 = arith.mulf %217, %220 : vector<2x32xf32>
    %222 = arith.addf %219, %221 : vector<2x32xf32>
    %223 = math.tanh %222 : vector<2x32xf32>
    %cst_55 = arith.constant 1.000000e+00 : f32
    %224 = vector.broadcast %cst_55 : f32 to vector<2x32xf32>
    %225 = arith.subf %224, %218 : vector<2x32xf32>
    %226 = arith.mulf %225, %223 : vector<2x32xf32>
    %227 = arith.mulf %218, %202 : vector<2x32xf32>
    %228 = arith.addf %226, %227 : vector<2x32xf32>
    %229 = tpu.concatenate %46, %72, %98, %124, %150, %176, %202, %228 in 0 : vector<2x32xf32>, vector<2x32xf32>, vector<2x32xf32>, vector<2x32xf32>, vector<2x32xf32>, vector<2x32xf32>, vector<2x32xf32>, vector<2x32xf32> -> vector<16x32xf32>
    %c0_56 = arith.constant 0 : index
    %c0_57 = arith.constant 0 : index
    %230 = vector.load %arg7[%c0_56, %c0_57] : memref<32x128xf32, #tpu.memory_space<vmem>>, vector<32x128xf32>
    %cst_58 = arith.constant dense<0.000000e+00> : vector<16x128xf32>
    %231 = tpu.matmul %229, %230, %cst_58 {dimension_numbers = #tpu.dot_dimension_numbers<[1], [0], [0], [1], [0, 0, 1, 1], [], []>} : vector<16x32xf32>, vector<32x128xf32>, vector<16x128xf32> -> vector<16x128xf32>
    %232 = vector.broadcast %4 : vector<1x128xf32> to vector<16x128xf32>
    %233 = arith.addf %231, %232 : vector<16x128xf32>
    %234 = tpu.iota {dimensions = array<i32: 1>} : vector<16x128xi32>
    %c2_i32 = arith.constant 2 : i32
    %235 = vector.broadcast %c2_i32 : i32 to vector<16x128xi32>
    %236 = arith.cmpi slt, %234, %235 : vector<16x128xi32>
    %c4_i32 = arith.constant 4 : i32
    %237 = vector.broadcast %c4_i32 : i32 to vector<16x128xi32>
    %238 = arith.cmpi slt, %234, %237 : vector<16x128xi32>
    %239 = math.exp %233 : vector<16x128xf32>
    %240 = math.tanh %233 : vector<16x128xf32>
    %241 = arith.select %238, %239, %240 : vector<16x128xi1>, vector<16x128xf32>
    %242 = arith.select %236, %233, %241 : vector<16x128xi1>, vector<16x128xf32>
    %c0_59 = arith.constant 0 : index
    %c0_60 = arith.constant 0 : index
    %243 = vector.load %arg8[%c0_59, %c0_60] : memref<16x128xf32, #tpu.memory_space<vmem>>, vector<16x128xf32>
    tpu.vector_store %arg8[%c0_59, %c0_60], %242 {strides = array<i32>} : memref<16x128xf32, #tpu.memory_space<vmem>>, vector<16x128xf32>,
    return
  }
}

</mosaic_0001>

<bundles_post_ra>
// kernel: decoder_stu_forward.1
= control target key start
LH: loop header
LB: loop body
LE: loop exit
PB: predicated region body
PF: predicated region fallthrough
CT: control target
= control target key end

     0   :  { %13 = vsyncpa [#allocation3], 0  ;;  %s2089_s0 = inlined_call_operand.hbm [shape: f32[16,32], index: 0, kind: input, shape index: {}]   ;;  %s2090_s1 = inlined_call_operand.vmem [shape: f32[2,5], index: 1, kind: input, shape index: {}]   ;;  %s2091_s2 = inlined_call_operand.hbm [shape: f32[32,32], index: 2, kind: input, shape index: {}]   ;;  %s2092_s3 = inlined_call_operand.hbm [shape: f32[5,32], index: 3, kind: input, shape index: {}]   ;;  %s2093_s4 = inlined_call_operand.vmem [shape: f32[32,128], index: 4, kind: input, shape index: {}]   ;;  %s2094_s5 = inlined_call_operand.hbm [shape: f32[32,128], index: 5, kind: input, shape index: {}]   ;;  %s2095_s6 = inlined_call_operand.vmem [shape: f32[4,128], index: 6, kind: input, shape index: {}]   ;;  %s2096_s7 = inlined_call_operand.hbm [shape: f32[32,128], index: 7, kind: input, shape index: {}]   ;;  %s2097_s8 = inlined_call_operand.vmem [shape: f32[16,128], index: 8, kind: output, shape index: {}]  }
   0x1   :  { %14 = vsyncpa [#allocation5], 0 }
   0x2   :  { %15 = vsyncpa [#allocation8], 0  ;;  %s1761_s27 = smov [#allocation4]   ;;  %s1762_s29 = smov [#allocation7]  }
   0x3   :  { %s35_s28 = sshll.u32 %s1761_s27, 4  ;;  %s59_s30 = sshll.u32 %s1762_s29, 4  ;;  %s36_s28 = int_to_ptr.vmem [resolvable:$true] %s35_s28  ;;  %s1818_s30 = int_to_ptr.vmem [resolvable:$true] %s59_s30 }
   0x4   :  { %s1645_s11 = scalar_lea.hbm %s2091_s2, 512 }
   0x5   :  { %p1646_p0 = scmp.ne.s32.totalorder %s2091_s2, %s1645_s11  ;;  %p1649_p1 = scmp.lt.u32.totalorder %s1645_s11, %s2091_s2 }
   0x7   :  { %p1651_p2 = pnand %p1649_p1, %p1646_p0 }
   0x9   :  { %1654 = shalt.err (!%p1651_p2)
}
   0xa   :  { %s1655_s16 = scalar_lea.vmem %s36_s28, 512  ;;  %p1660_p4 = scmp.lt.s32.totalorder %s36_s28, %s36_s28 }
   0xb   :  { %p1656_p3 = scmp.ne.s32.totalorder %s36_s28, %s1655_s16  ;;  %p1661_p5 = scmp.lt.s32.totalorder %s1655_s16, %s1655_s16 }
   0xd   :  { %p1662_p6 = por %p1661_p5, %p1660_p4 }
   0xf   :  { %p1663_p7 = pnand %p1662_p6, %p1656_p3 }
  0x11   :  { %1666 = shalt.err (!%p1663_p7)
}
  0x12   :  { %s1763_s17 = smov 128   ;;  %s1764_s18 = smov 8  }
  0x13   :  { %41 = dma.hbm_to_vmem [thread:$0]  %s2091_s2, 512, %s36_s28, [#allocation5], %s1763_s17, %s1763_s17, %s1764_s18  }
  0x14   :  { %s1667_s23 = scalar_lea.hbm %s2094_s5, 512 }
  0x15   :  { %p1668_p8 = scmp.ne.s32.totalorder %s2094_s5, %s1667_s23  ;;  %p1671_p9 = scmp.lt.u32.totalorder %s1667_s23, %s2094_s5 }
  0x17   :  { %p1673_p10 = pnand %p1671_p9, %p1668_p8 }
  0x19   :  { %1676 = shalt.err (!%p1673_p10)
}
  0x1a   :  { %s1677_s29 = scalar_lea.vmem %s1818_s30, 512  ;;  %p1682_p12 = scmp.lt.s32.totalorder %s1818_s30, %s1818_s30 }
  0x1b   :  { %p1678_p11 = scmp.ne.s32.totalorder %s1818_s30, %s1677_s29  ;;  %p1683_p13 = scmp.lt.s32.totalorder %s1677_s29, %s1677_s29 }
  0x1d   :  { %p1684_p0 = por %p1683_p13, %p1682_p12 }
  0x1f   :  { %p1685_p1 = pnand %p1684_p0, %p1678_p11 }
  0x21   :  { %1688 = shalt.err (!%p1685_p1)
}
  0x22   :  { %65 = dma.hbm_to_vmem [thread:$0]  %s2094_s5, 512, %s1818_s30, [#allocation8], %s1763_s17, %s1763_s17, %s1764_s18  }
  0x23   :  { %s1765_s9 = smov [#allocation2]   ;;  %s1766_s11 = smov [#allocation6]  }
  0x24   :  { %s21_s10 = sshll.u32 %s1765_s9, 4  ;;  %s48_s12 = sshll.u32 %s1766_s11, 4  ;;  %s22_s10 = int_to_ptr.vmem [resolvable:$true] %s21_s10  ;;  %s49_s12 = int_to_ptr.vmem [resolvable:$true] %s48_s12 }
  0x25   :  { %s1689_s15 = scalar_lea.hbm %s2089_s0, 256 }
  0x26   :  { %p1690_p2 = scmp.ne.s32.totalorder %s2089_s0, %s1689_s15  ;;  %p1693_p3 = scmp.lt.u32.totalorder %s1689_s15, %s2089_s0 }
  0x28   :  { %p1695_p4 = pnand %p1693_p3, %p1690_p2 }
  0x2a   :  { %1698 = shalt.err (!%p1695_p4)
}
  0x2b   :  { %s1699_s5 = scalar_lea.vmem %s22_s10, 256  ;;  %p1704_p6 = scmp.lt.s32.totalorder %s22_s10, %s22_s10 }
  0x2c   :  { %p1700_p5 = scmp.ne.s32.totalorder %s22_s10, %s1699_s5  ;;  %p1705_p7 = scmp.lt.s32.totalorder %s1699_s5, %s1699_s5 }
  0x2e   :  { %p1706_p8 = por %p1705_p7, %p1704_p6 }
  0x30   :  { %p1707_p9 = pnand %p1706_p8, %p1700_p5 }
  0x32   :  { %1710 = shalt.err (!%p1707_p9)
}
  0x33   :  { %27 = dma.hbm_to_vmem [thread:$0]  %s2089_s0, 256, %s22_s10, [#allocation3], %s1763_s17, %s1763_s17, %s1764_s18  }
  0x34   :  { %s1711_s25 = scalar_lea.hbm %s2092_s3, 128 }
  0x35   :  { %p1712_p10 = scmp.ne.s32.totalorder %s2092_s3, %s1711_s25  ;;  %p1715_p11 = scmp.lt.u32.totalorder %s1711_s25, %s2092_s3 }
  0x37   :  { %p1717_p12 = pnand %p1715_p11, %p1712_p10 }
  0x39   :  { %1720 = shalt.err (!%p1717_p12)
}
  0x3a   :  { %s1721_s28 = scalar_lea.vmem %s49_s12, 128  ;;  %p1726_p0 = scmp.lt.s32.totalorder %s49_s12, %s49_s12 }
  0x3b   :  { %p1722_p13 = scmp.ne.s32.totalorder %s49_s12, %s1721_s28  ;;  %p1727_p1 = scmp.lt.s32.totalorder %s1721_s28, %s1721_s28 }
  0x3d   :  { %p1728_p2 = por %p1727_p1, %p1726_p0 }
  0x3f   :  { %p1729_p3 = pnand %p1728_p2, %p1722_p13 }
  0x41   :  { %1732 = shalt.err (!%p1729_p3)
}
  0x42   :  { %51 = dma.hbm_to_vmem [thread:$0]  %s2092_s3, 128, %s49_s12, [#allocation5]  }
  0x43   :  { %s1767_s10 = smov [#allocation9]   ;;  %s1733_s15 = scalar_lea.hbm %s2096_s7, 512 }
  0x44   :  { %s73_s11 = sshll.u32 %s1767_s10, 4  ;;  %p1734_p4 = scmp.ne.s32.totalorder %s2096_s7, %s1733_s15  ;;  %s74_s11 = int_to_ptr.vmem [resolvable:$true] %s73_s11 }
  0x45   :  { %p1737_p5 = scmp.lt.u32.totalorder %s1733_s15, %s2096_s7 }
  0x47   :  { %p1739_p6 = pnand %p1737_p5, %p1734_p4 }
  0x49   :  { %1742 = shalt.err (!%p1739_p6)
}
  0x4a   :  { %s1743_s5 = scalar_lea.vmem %s74_s11, 512  ;;  %p1748_p8 = scmp.lt.s32.totalorder %s74_s11, %s74_s11 }
  0x4b   :  { %p1744_p7 = scmp.ne.s32.totalorder %s74_s11, %s1743_s5  ;;  %p1749_p9 = scmp.lt.s32.totalorder %s1743_s5, %s1743_s5 }
  0x4d   :  { %p1750_p10 = por %p1749_p9, %p1748_p8 }
  0x4f   :  { %p1751_p11 = pnand %p1750_p10, %p1744_p7 }
  0x51   :  { %1754 = shalt.err (!%p1751_p11)
}
  0x52   :  { %79 = dma.hbm_to_vmem [thread:$0]  %s2096_s7, 512, %s74_s11, [#allocation8], %s1763_s17, %s1763_s17, %s1764_s18  }
  0x53   :  { %1755 = dma.done.wait [#allocation3], 256  }
  0x54   :  { %1756 = vsyncadd [#allocation3], 4294967040 }
  0x55   :  { %1757 = dma.done.wait [#allocation5], 640  }
  0x56   :  { %1758 = vsyncadd [#allocation5], 4294966656 }
  0x57   :  { %1759 = dma.done.wait [#allocation8], 1024  }
  0x58   :  { %1760 = vsyncadd [#allocation8], 4294966272  ;;  %v1768_v0 = vmov 0.0   ;;  %vm1769_vm0 = vmmov 0   ;;  %vm112_vm1 = vcmask 1044480   ;;  %vm108_vm2 = vcmask 39936  }
  0x59   :  { %1395 = vmatprep.subr.mxu0 %v1768_v0  ;;  %1397 = vmatprep.mubr.msk.f32.mxu0 %vm1769_vm0, %v1768_v0  ;;  %v103_v1 = vld [vmem:[#allocation6] sm:$0x1f]  ;;  %v102_v2 = vld [vmem:[%s2090_s1] sm:$0x3]  ;;  %vm199_vm3 = vcmask 261120   ;;  %v99_v4 = vld [vmem:[#allocation4 + $0x8] sm:$0xff]  ;;  %v104_v24 = vlaneseq }
  0x5a   :  { %v98_v3 = vld [vmem:[#allocation4] sm:$0xff]  ;;  %1396 = vmatpush3.msk.msra.mxu0 %vm112_vm1, %v103_v1  ;;  %v100_v5 = vld [vmem:[#allocation4 + $0x10] sm:$0xff]  ;;  %v101_v6 = vld [vmem:[#allocation4 + $0x18] sm:$0xff]  ;;  %v1770_v14 = vmov 0.0|0.0   ;;  %vm193_vm4 = vcmask 1041408   ;;  %vm195_vm5 = vcmask 1043456  }
  0x5b   :  { %1398 = vmatmul.mubr.msk.f32.vlgmr.msra.gmra.mrb[0].mxu0 %vm108_vm2, %v102_v2  ;;  %v1521_v7 = vpack.c.bf16 %v99_v4, %v98_v3  ;;  %v1525_v8 = vpack.c.bf16 %v101_v6, %v100_v5  ;;  %v96_v9 = vld [vmem:[#allocation2] sm:$0xff]  ;;  %v370_v10 = vld [vmem:[#allocation7] sm:$0xff]  ;;  %v97_v12 = vld [vmem:[#allocation2 + $0x8] sm:$0xff]  ;;  %v1937_v25 = vshrl.u32 %v104_v24, 7  ;;  %vm197_vm6 = vcmask 1045504  }
  0x5c   :  { %1408 = vmatprep.mubr.msk.f32.mxu1 %vm199_vm3, %v96_v9  ;;  %v371_v11 = vld [vmem:[#allocation7 + $0x8] sm:$0xff]  ;;  %v372_v15 = vld [vmem:[#allocation7 + $0x10] sm:$0xff]  ;;  %v373_v16 = vld [vmem:[#allocation7 + $0x18] sm:$0xff] }
  0x5d   :  { %1522 = vmatprep.subr.bf16.mxu1 %v1521_v7  ;;  %v1904_v13 = vpack.c.bf16 %v371_v11, %v370_v10  ;;  %v1909_v17 = vpack.c.bf16 %v373_v16, %v372_v15  ;;  %v281_v18 = vld [vmem:[%s2093_s4] sm:$0xff]  ;;  %v282_v19 = vld [vmem:[%s2093_s4 + $0x8] sm:$0xff]  ;;  %v283_v21 = vld [vmem:[%s2093_s4 + $0x10] sm:$0xff]  ;;  %v106_v26 = vsub.s32 0, %v1937_v25  ;;  %v376_v39 = vsub.s32 2, %v1937_v25 }
  0x5e   :  { %1524 = vmatpush3.bf16.msra.mxu1 %v1521_v7  ;;  %v1529_v20 = vpack.c.bf16 %v282_v19, %v281_v18  ;;  %v284_v22 = vld [vmem:[%s2093_s4 + $0x18] sm:$0xff]  ;;  %v1943_v27 = vld [vmem:[%s2095_s6] sm:$0xf]  ;;  %s1771_s4 = smov 64   ;;  %v287_v47 = vsub.s32 1, %v1937_v25  ;;  %s1772_s6 = smov 96  }
  0x5f   :  { %1526 = vmatprep.subr.bf16.mxu1 %v1525_v8  ;;  %v1533_v23 = vpack.c.bf16 %v284_v22, %v283_v21  ;;  %v107_v28 = vrot.slane %v1943_v27, %v106_v26  ;;  %v1952_v43 = vrot.slane %v1943_v27, %v376_v39 }
  0x60   :  { %1530 = vmatprep.subr.bf16.mxu0 %v1529_v20  ;;  %v288_v48 = vrot.slane %v1943_v27, %v287_v47 }
  0x61   :  { %1532 = vmatpush3.bf16.msra.mxu0 %v1529_v20 }
  0x62   :  { %1528 = vmatpush3.bf16.msra.mxu1 %v1525_v8  ;;  %1534 = vmatprep.subr.bf16.mxu0 %v1533_v23 }
  0x63   :  { %1537 = vmatprep.subr.bf16.mxu1 %v1770_v14 }
  0x65   :  { %1409 = vmatmul.mubr.msk.f32.vlgmr.msra.gmra.mrb[0].mxu1 %vm199_vm3, %v97_v12  ;;  %1536 = vmatpush3.bf16.msra.mxu0 %v1533_v23 }
  0x66   :  { %1539 = vmatpush3.bf16.msra.mxu1 %v1904_v13  ;;  %1430 = vmatprep.mubr.msk.f32.mxu1 %vm1769_vm0, %v1768_v0 }
  0x67   :  { %1540 = vmatprep.subr.bf16.mxu1 %v1770_v14  ;;  %1543 = vmatprep.subr.bf16.mxu0 %v1770_v14 }
  0x6a   :  { %1542 = vmatpush3.bf16.msra.mxu1 %v1909_v17 }
  0x6b   :  { %1549 = vmatprep.subr.bf16.mxu1 %v1770_v14 }
  0x6d   :  { %1431 = vmatmul.mubr.f32.vlgmr.msra.gmra.mrb[2].mxu1 %v1768_v0 }
  0x6e   :  { %1551 = vmatpush3.bf16.msra.mxu1 %v1904_v13  ;;  %1452 = vmatprep.mubr.msk.f32.mxu1 %vm1769_vm0, %v1768_v0 }
  0x6f   :  { %1552 = vmatprep.subr.bf16.mxu1 %v1770_v14 }
  0x72   :  { %1554 = vmatpush3.bf16.msra.mxu1 %v1909_v17 }
  0x73   :  { %1561 = vmatprep.subr.bf16.mxu1 %v1770_v14 }
 0x12e   :  { %v182_v29 = vpop.f32.mrb[0].mxu0 }
 0x12f   :  { %v183_v30 = vadd.f32 %v182_v29, %v107_v28  ;;  %v1399_v31 = vpop.f32.mrb[1].mxu0 }
 0x131   :  { %v187_v32 = vrot.slane %v183_v30, 6  ;;  %v189_v33 = vrot.slane %v183_v30, 4  ;;  %v191_v34 = vrot.slane %v183_v30, 2 }
 0x133   :  { %v194_v35 = vsel %vm193_vm4, %v183_v30, %v187_v32 }
 0x134   :  { %v196_v36 = vsel %vm195_vm5, %v194_v35, %v189_v33 }
 0x135   :  { %v198_v37 = vsel %vm197_vm6, %v196_v36, %v191_v34 }
 0x138   :  { %v1410_v38 = vpop.f32.mrb[0].mxu1 }
 0x139   :  { %v278_v40 = vadd.f32 %v1410_v38, %v198_v37  ;;  %v272_v41 = vpop.f32.mrb[1].mxu1 }
 0x13a   :  { %v273_v42 = vadd.f32 %v272_v41, %v198_v37 }
 0x13c   :  { %1419 = vmatprep.mubr.msk.f32.mxu0 %vm199_vm3, %v273_v42 }
 0x13d   :  { %1420 = vmatmul.mubr.msk.f32.vlgmr.msra.gmra.mrb[2].mxu0 %vm199_vm3, %v278_v40 }
 0x13e   :  { %1545 = vmatpush3.bf16.msra.mxu0 %v1904_v13  ;;  %1441 = vmatprep.mubr.msk.f32.mxu0 %vm1769_vm0, %v1768_v0 }
 0x13f   :  { %1546 = vmatprep.subr.bf16.mxu0 %v1770_v14 }
 0x140   :  { %v447_v44 = vpop.f32.mrb[2].mxu1 }
 0x141   :  { %v448_v45 = vadd.f32 %v447_v44, %v1952_v43  ;;  %v1432_v46 = vpop.f32.mrb[3].mxu1 }
 0x142   :  { %1548 = vmatpush3.bf16.msra.mxu0 %v1909_v17 }
 0x143   :  { %457 = vrot.lane.b32.xlu0 %v448_v45, %s1771_s4  ;;  %1555 = vmatprep.subr.bf16.mxu0 %v1770_v14 }
 0x1b5   :  { %v458_v57 = vpop.permute.xlu0 %457 }
 0x210   :  { %v1421_v49 = vpop.f32.mrb[2].mxu0 }
 0x211   :  { %v1965_v50 = vadd.f32 %v1421_v49, %v288_v48  ;;  %v361_v51 = vpop.f32.mrb[3].mxu0 }
 0x212   :  { %v1967_v52 = vadd.f32 %v361_v51, %v288_v48 }
 0x214   :  { %v451_v53 = vadd.f32 %v448_v45, %v1967_v52 }
 0x216   :  { %v452_v54 = vmul.f32 0.5, %v451_v53 }
 0x218   :  { %1605 = vtanh.f32 %v452_v54 }
 0x222   :  { %v1606_v55 = vpop.eup %1605 }
 0x223   :  { %v454_v56 = vadd.f32 1.0, %v1606_v55 }
 0x225   :  { %v455_v58 = vmul.f32 0.5, %v454_v56 }
 0x227   :  { %v460_v59 = vmul.f32 %v458_v57, %v455_v58  ;;  %v467_v63 = vsub.f32 1.0, %v455_v58  ;;  %v473_v2 = vmul.f32 0.0, %v455_v58 }
 0x229   :  { %462 = vrot.lane.b32.xlu0 %v460_v59, %s1771_s4 }
 0x29b   :  { %v463_v60 = vpop.permute.xlu0 %462 }
 0x29c   :  { %v465_v61 = vadd.f32 %v463_v60, %v1967_v52 }
 0x29e   :  { %1607 = vtanh.f32 %v465_v61 }
 0x2a8   :  { %v1608_v62 = vpop.eup %1607 }
 0x2a9   :  { %469 = vrot.lane.b32.xlu1 %v1608_v62, %s1772_s6 }
 0x31b   :  { %v470_v1 = vpop.permute.xlu1 %469 }
 0x31c   :  { %v472_v3 = vmul.f32 %v470_v1, %v467_v63 }
 0x31e   :  { %v1973_v4 = vadd.f32 %v473_v2, %v472_v3 }
 0x320   :  { %476 = vrot.lane.b32.xlu1 %v1973_v4, %s1772_s6  ;;  %v574_v26 = vrot.slane %v1973_v4, 6 }
 0x392   :  { %v477_v5 = vpop.permute.xlu1 %476 }
 0x393   :  { %1442 = vmatmul.mubr.msk.f32.vlgmr.msra.gmra.mrb[4].mxu0 %vm199_vm3, %v477_v5 }
 0x394   :  { %1557 = vmatpush3.bf16.msra.mxu0 %v1904_v13  ;;  %1463 = vmatprep.mubr.msk.f32.mxu0 %vm1769_vm0, %v1768_v0 }
 0x395   :  { %1558 = vmatprep.subr.bf16.mxu0 %v1770_v14 }
 0x398   :  { %1560 = vmatpush3.bf16.msra.mxu0 %v1909_v17 }
 0x399   :  { %1567 = vmatprep.subr.bf16.mxu0 %v1770_v14 }
 0x466   :  { %v546_v6 = vpop.f32.mrb[4].mxu0 }
 0x467   :  { %v547_v7 = vadd.f32 %v546_v6, %v1952_v43  ;;  %v1443_v8 = vpop.f32.mrb[5].mxu0 }
 0x469   :  { %v551_v9 = vrot.slane %v547_v7, 6 }
 0x46b   :  { %558 = vrot.lane.b32.xlu0 %v551_v9, %s1771_s4  ;;  %v553_v10 = vadd.f32 %v551_v9, %v1967_v52 }
 0x46d   :  { %v554_v11 = vmul.f32 0.5, %v553_v10 }
 0x46f   :  { %1609 = vtanh.f32 %v554_v11 }
 0x479   :  { %v1610_v12 = vpop.eup %1609 }
 0x47a   :  { %v556_v15 = vadd.f32 1.0, %v1610_v12 }
 0x47c   :  { %v557_v16 = vmul.f32 0.5, %v556_v15 }
 0x47e   :  { %v568_v23 = vsub.f32 1.0, %v557_v16  ;;  %v576_v30 = vmul.f32 %v574_v26, %v557_v16 }
 0x4dd   :  { %v559_v18 = vpop.permute.xlu0 %558 }
 0x4de   :  { %v561_v19 = vmul.f32 %v559_v18, %v557_v16 }
 0x4e0   :  { %563 = vrot.lane.b32.xlu1 %v561_v19, %s1771_s4 }
 0x552   :  { %v564_v20 = vpop.permute.xlu1 %563 }
 0x553   :  { %v566_v21 = vadd.f32 %v564_v20, %v1967_v52 }
 0x555   :  { %1611 = vtanh.f32 %v566_v21 }
 0x55f   :  { %v1612_v22 = vpop.eup %1611 }
 0x560   :  { %570 = vrot.lane.b32.xlu0 %v1612_v22, %s1772_s6 }
 0x5d2   :  { %v571_v28 = vpop.permute.xlu0 %570 }
 0x5d3   :  { %v573_v29 = vmul.f32 %v571_v28, %v568_v23 }
 0x5d5   :  { %v577_v31 = vadd.f32 %v576_v30, %v573_v29 }
 0x5d7   :  { %v579_v32 = vrot.slane %v577_v31, 2  ;;  %v678_v51 = vrot.slane %v577_v31, 6  ;;  %v1198_v57 = vsel %vm193_vm4, %v1973_v4, %v577_v31 }
 0x5d9   :  { %580 = vrot.lane.b32.xlu1 %v579_v32, %s1772_s6 }
 0x64b   :  { %v581_v33 = vpop.permute.xlu1 %580 }
 0x64c   :  { %1453 = vmatmul.mubr.msk.f32.vlgmr.msra.gmra.mrb[4].mxu1 %vm199_vm3, %v581_v33 }
 0x64d   :  { %1563 = vmatpush3.bf16.msra.mxu1 %v1904_v13  ;;  %1474 = vmatprep.mubr.msk.f32.mxu1 %vm1769_vm0, %v1768_v0 }
 0x64e   :  { %1564 = vmatprep.subr.bf16.mxu1 %v1770_v14 }
 0x651   :  { %1566 = vmatpush3.bf16.msra.mxu1 %v1909_v17 }
 0x652   :  { %1573 = vmatprep.subr.bf16.mxu1 %v1770_v14 }
 0x71f   :  { %v650_v34 = vpop.f32.mrb[4].mxu1 }
 0x720   :  { %v651_v35 = vadd.f32 %v650_v34, %v1952_v43  ;;  %v1454_v36 = vpop.f32.mrb[5].mxu1 }
 0x722   :  { %v655_v37 = vrot.slane %v651_v35, 4 }
 0x724   :  { %662 = vrot.lane.b32.xlu0 %v655_v37, %s1771_s4  ;;  %v657_v38 = vadd.f32 %v655_v37, %v1967_v52 }
 0x726   :  { %v658_v39 = vmul.f32 0.5, %v657_v38 }
 0x728   :  { %1613 = vtanh.f32 %v658_v39 }
 0x732   :  { %v1614_v40 = vpop.eup %1613 }
 0x733   :  { %v660_v41 = vadd.f32 1.0, %v1614_v40 }
 0x735   :  { %v661_v42 = vmul.f32 0.5, %v660_v41 }
 0x737   :  { %v672_v49 = vsub.f32 1.0, %v661_v42  ;;  %v680_v54 = vmul.f32 %v678_v51, %v661_v42 }
 0x796   :  { %v663_v44 = vpop.permute.xlu0 %662 }
 0x797   :  { %v665_v45 = vmul.f32 %v663_v44, %v661_v42 }
 0x799   :  { %667 = vrot.lane.b32.xlu1 %v665_v45, %s1771_s4 }
 0x80b   :  { %v668_v46 = vpop.permute.xlu1 %667 }
 0x80c   :  { %v670_v47 = vadd.f32 %v668_v46, %v1967_v52 }
 0x80e   :  { %1615 = vtanh.f32 %v670_v47 }
 0x818   :  { %v1616_v48 = vpop.eup %1615 }
 0x819   :  { %674 = vrot.lane.b32.xlu0 %v1616_v48, %s1772_s6 }
 0x88b   :  { %v675_v53 = vpop.permute.xlu0 %674 }
 0x88c   :  { %v677_v55 = vmul.f32 %v675_v53, %v672_v49 }
 0x88e   :  { %v681_v56 = vadd.f32 %v680_v54, %v677_v55 }
 0x890   :  { %v683_v58 = vrot.slane %v681_v56, 4  ;;  %v1199_v59 = vsel %vm195_vm5, %v1198_v57, %v681_v56  ;;  %v782_v15 = vrot.slane %v681_v56, 6 }
 0x892   :  { %684 = vrot.lane.b32.xlu1 %v683_v58, %s1772_s6 }
 0x904   :  { %v685_v60 = vpop.permute.xlu1 %684 }
 0x905   :  { %1464 = vmatmul.mubr.msk.f32.vlgmr.msra.gmra.mrb[6].mxu0 %vm199_vm3, %v685_v60 }
 0x906   :  { %1569 = vmatpush3.bf16.msra.mxu0 %v1904_v13  ;;  %1485 = vmatprep.mubr.msk.f32.mxu0 %vm1769_vm0, %v1768_v0 }
 0x907   :  { %1570 = vmatprep.subr.bf16.mxu0 %v1770_v14 }
 0x90a   :  { %1572 = vmatpush3.bf16.msra.mxu0 %v1909_v17 }
 0x90b   :  { %1579 = vmatprep.subr.bf16.mxu0 %v1770_v14 }
 0x9d8   :  { %v754_v61 = vpop.f32.mrb[6].mxu0 }
 0x9d9   :  { %v755_v62 = vadd.f32 %v754_v61, %v1952_v43  ;;  %v1465_v63 = vpop.f32.mrb[7].mxu0 }
 0x9db   :  { %v759_v1 = vrot.slane %v755_v62, 2 }
 0x9dd   :  { %766 = vrot.lane.b32.xlu0 %v759_v1, %s1771_s4  ;;  %v761_v2 = vadd.f32 %v759_v1, %v1967_v52 }
 0x9df   :  { %v762_v3 = vmul.f32 0.5, %v761_v2 }
 0x9e1   :  { %1617 = vtanh.f32 %v762_v3 }
 0x9eb   :  { %v1618_v4 = vpop.eup %1617 }
 0x9ec   :  { %v764_v5 = vadd.f32 1.0, %v1618_v4 }
 0x9ee   :  { %v765_v6 = vmul.f32 0.5, %v764_v5 }
 0x9f0   :  { %v776_v12 = vsub.f32 1.0, %v765_v6  ;;  %v784_v18 = vmul.f32 %v782_v15, %v765_v6 }
 0xa4f   :  { %v767_v7 = vpop.permute.xlu0 %766 }
 0xa50   :  { %v769_v8 = vmul.f32 %v767_v7, %v765_v6 }
 0xa52   :  { %771 = vrot.lane.b32.xlu1 %v769_v8, %s1771_s4 }
 0xac4   :  { %v772_v9 = vpop.permute.xlu1 %771 }
 0xac5   :  { %v774_v10 = vadd.f32 %v772_v9, %v1967_v52 }
 0xac7   :  { %1619 = vtanh.f32 %v774_v10 }
 0xad1   :  { %v1620_v11 = vpop.eup %1619 }
 0xad2   :  { %778 = vrot.lane.b32.xlu0 %v1620_v11, %s1772_s6 }
 0xb44   :  { %v779_v16 = vpop.permute.xlu0 %778 }
 0xb45   :  { %v781_v19 = vmul.f32 %v779_v16, %v776_v12 }
 0xb47   :  { %v785_v20 = vadd.f32 %v784_v18, %v781_v19 }
 0xb49   :  { %v787_v21 = vrot.slane %v785_v20, 6  ;;  %v2023_v22 = vsel %vm197_vm6, %v1199_v59, %v785_v20 }
 0xb4b   :  { %788 = vrot.lane.b32.xlu1 %v787_v21, %s1772_s6 }
 0xbbd   :  { %v789_v23 = vpop.permute.xlu1 %788 }
 0xbbe   :  { %1475 = vmatmul.mubr.msk.f32.vlgmr.msra.gmra.mrb[6].mxu1 %vm199_vm3, %v789_v23 }
 0xbbf   :  { %1575 = vmatpush3.bf16.msra.mxu1 %v1904_v13  ;;  %1496 = vmatprep.mubr.msk.f32.mxu1 %vm1769_vm0, %v1768_v0 }
 0xbc0   :  { %1576 = vmatprep.subr.bf16.mxu1 %v1770_v14 }
 0xbc3   :  { %1578 = vmatpush3.bf16.msra.mxu1 %v1909_v17 }
 0xc91   :  { %v858_v52 = vpop.f32.mrb[6].mxu1 }
 0xc92   :  { %v859_v26 = vadd.f32 %v858_v52, %v1952_v43  ;;  %v1476_v28 = vpop.f32.mrb[7].mxu1 }
 0xc94   :  { %868 = vrot.lane.b32.xlu0 %v859_v26, %s1771_s4  ;;  %v862_v29 = vadd.f32 %v859_v26, %v1965_v50 }
 0xc96   :  { %v863_v30 = vmul.f32 0.5, %v862_v29 }
 0xc98   :  { %1621 = vtanh.f32 %v863_v30 }
 0xca2   :  { %v1622_v31 = vpop.eup %1621 }
 0xca3   :  { %v865_v32 = vadd.f32 1.0, %v1622_v31 }
 0xca5   :  { %v866_v33 = vmul.f32 0.5, %v865_v32 }
 0xca7   :  { %v878_v39 = vsub.f32 1.0, %v866_v33  ;;  %v885_v41 = vmul.f32 %v866_v33, %v787_v21 }
 0xd06   :  { %v869_v34 = vpop.permute.xlu0 %868 }
 0xd07   :  { %v871_v35 = vmul.f32 %v869_v34, %v866_v33 }
 0xd09   :  { %873 = vrot.lane.b32.xlu1 %v871_v35, %s1771_s4 }
 0xd7b   :  { %v874_v36 = vpop.permute.xlu1 %873 }
 0xd7c   :  { %v876_v37 = vadd.f32 %v874_v36, %v1965_v50 }
 0xd7e   :  { %1623 = vtanh.f32 %v876_v37 }
 0xd88   :  { %v1624_v38 = vpop.eup %1623 }
 0xd89   :  { %880 = vrot.lane.b32.xlu0 %v1624_v38, %s1772_s6 }
 0xdfb   :  { %v881_v40 = vpop.permute.xlu0 %880 }
 0xdfc   :  { %v883_v42 = vmul.f32 %v881_v40, %v878_v39 }
 0xdfe   :  { %v2038_v44 = vadd.f32 %v885_v41, %v883_v42 }
 0xe00   :  { %888 = vrot.lane.b32.xlu1 %v2038_v44, %s1772_s6  ;;  %v986_v59 = vrot.slane %v2038_v44, 6 }
 0xe72   :  { %v889_v45 = vpop.permute.xlu1 %888 }
 0xe73   :  { %1486 = vmatmul.mubr.msk.f32.vlgmr.msra.gmra.mrb[8].mxu0 %vm199_vm3, %v889_v45 }
 0xe74   :  { %1581 = vmatpush3.bf16.msra.mxu0 %v1904_v13  ;;  %1507 = vmatprep.mubr.msk.f32.mxu0 %vm1769_vm0, %v1768_v0 }
 0xe75   :  { %1582 = vmatprep.subr.bf16.mxu0 %v1770_v14 }
 0xe78   :  { %1584 = vmatpush3.bf16.msra.mxu0 %v1909_v17 }
 0xf46   :  { %v958_v46 = vpop.f32.mrb[8].mxu0 }
 0xf47   :  { %v959_v47 = vadd.f32 %v958_v46, %v1952_v43  ;;  %v1487_v48 = vpop.f32.mrb[9].mxu0 }
 0xf48   :  { %v1205_v48 = vld [vmem:[#allocation9 + $0x8] sm:$0xff] }
 0xf49   :  { %v963_v49 = vrot.slane %v959_v47, 6  ;;  %v1204_v47 = vld [vmem:[#allocation9] sm:$0xff] }
 0xf4b   :  { %970 = vrot.lane.b32.xlu0 %v963_v49, %s1771_s4  ;;  %v965_v51 = vadd.f32 %v963_v49, %v1965_v50  ;;  %v1206_v49 = vld [vmem:[#allocation9 + $0x10] sm:$0xff] }
 0xf4d   :  { %v966_v53 = vmul.f32 0.5, %v965_v51  ;;  %v1585_v51 = vpack.c.bf16 %v1205_v48, %v1204_v47 }
 0xf4f   :  { %1625 = vtanh.f32 %v966_v53  ;;  %v1207_v53 = vld [vmem:[#allocation9 + $0x18] sm:$0xff]  ;;  %1586 = vmatprep.subr.bf16.mxu1 %v1585_v51 }
 0xf59   :  { %v1626_v54 = vpop.eup %1625 }
 0xf5a   :  { %v968_v13 = vadd.f32 1.0, %v1626_v54  ;;  %v1589_v54 = vpack.c.bf16 %v1207_v53, %v1206_v49 }
 0xf5c   :  { %v969_v55 = vmul.f32 0.5, %v968_v13 }
 0xf5e   :  { %v980_v58 = vsub.f32 1.0, %v969_v55  ;;  %v988_v62 = vmul.f32 %v986_v59, %v969_v55 }
 0xfbd   :  { %v971_v56 = vpop.permute.xlu0 %970 }
 0xfbe   :  { %v973_v0 = vmul.f32 %v971_v56, %v969_v55 }
 0xfc0   :  { %975 = vrot.lane.b32.xlu1 %v973_v0, %s1771_s4 }
0x1032   :  { %v976_v14 = vpop.permute.xlu1 %975 }
0x1033   :  { %v978_v17 = vadd.f32 %v976_v14, %v1965_v50 }
0x1035   :  { %1627 = vtanh.f32 %v978_v17 }
0x103f   :  { %v1628_v57 = vpop.eup %1627 }
0x1040   :  { %982 = vrot.lane.b32.xlu0 %v1628_v57, %s1772_s6 }
0x10b2   :  { %v983_v60 = vpop.permute.xlu0 %982 }
0x10b3   :  { %v985_v61 = vmul.f32 %v983_v60, %v980_v58  ;;  %v1210_v58 = vsub.s32 3, %v1937_v25 }
0x10b5   :  { %v989_v63 = vadd.f32 %v988_v62, %v985_v61  ;;  %v1211_v59 = vrot.slane %v1943_v27, %v1210_v58 }
0x10b7   :  { %v991_v1 = vrot.slane %v989_v63, 2  ;;  %v1090_v21 = vrot.slane %v989_v63, 6  ;;  %v1201_v29 = vsel %vm193_vm4, %v2038_v44, %v989_v63 }
0x10b9   :  { %992 = vrot.lane.b32.xlu1 %v991_v1, %s1772_s6 }
0x112b   :  { %v993_v2 = vpop.permute.xlu1 %992 }
0x112c   :  { %1497 = vmatmul.mubr.msk.f32.vlgmr.msra.gmra.mrb[8].mxu1 %vm199_vm3, %v993_v2 }
0x112d   :  { %1588 = vmatpush3.bf16.msra.mxu1 %v1585_v51 }
0x112e   :  { %1590 = vmatprep.subr.bf16.mxu1 %v1589_v54 }
0x1131   :  { %1592 = vmatpush3.bf16.msra.mxu1 %v1589_v54 }
0x11ff   :  { %v1062_v3 = vpop.f32.mrb[8].mxu1 }
0x1200   :  { %v1063_v4 = vadd.f32 %v1062_v3, %v1952_v43  ;;  %v1498_v5 = vpop.f32.mrb[9].mxu1  ;;  %v1298_v3 = vand.u32 127, %v104_v24 }
0x1202   :  { %v1067_v6 = vrot.slane %v1063_v4, 4  ;;  %vm1300_vm7 = vcmp.lt.s32.totalorder %v1298_v3, 4  ;;  %vm1299_vm8 = vcmp.lt.s32.totalorder %v1298_v3, 2 }
0x1204   :  { %1074 = vrot.lane.b32.xlu0 %v1067_v6, %s1771_s4  ;;  %v1069_v7 = vadd.f32 %v1067_v6, %v1965_v50 }
0x1206   :  { %v1070_v8 = vmul.f32 0.5, %v1069_v7 }
0x1208   :  { %1629 = vtanh.f32 %v1070_v8 }
0x1212   :  { %v1630_v9 = vpop.eup %1629 }
0x1213   :  { %v1072_v10 = vadd.f32 1.0, %v1630_v9 }
0x1215   :  { %v1073_v11 = vmul.f32 0.5, %v1072_v10 }
0x1217   :  { %v1084_v20 = vsub.f32 1.0, %v1073_v11  ;;  %v1092_v52 = vmul.f32 %v1090_v21, %v1073_v11 }
0x1276   :  { %v1075_v12 = vpop.permute.xlu0 %1074 }
0x1277   :  { %v1077_v15 = vmul.f32 %v1075_v12, %v1073_v11 }
0x1279   :  { %1079 = vrot.lane.b32.xlu1 %v1077_v15, %s1771_s4 }
0x12eb   :  { %v1080_v16 = vpop.permute.xlu1 %1079 }
0x12ec   :  { %v1082_v18 = vadd.f32 %v1080_v16, %v1965_v50 }
0x12ee   :  { %1631 = vtanh.f32 %v1082_v18 }
0x12f8   :  { %v1632_v19 = vpop.eup %1631 }
0x12f9   :  { %1086 = vrot.lane.b32.xlu0 %v1632_v19, %s1772_s6 }
0x136b   :  { %v1087_v23 = vpop.permute.xlu0 %1086 }
0x136c   :  { %v1089_v26 = vmul.f32 %v1087_v23, %v1084_v20 }
0x136e   :  { %v1093_v28 = vadd.f32 %v1092_v52, %v1089_v26 }
0x1370   :  { %v1095_v30 = vrot.slane %v1093_v28, 4  ;;  %v1202_v31 = vsel %vm195_vm5, %v1201_v29, %v1093_v28  ;;  %v1194_v55 = vrot.slane %v1093_v28, 6 }
0x1372   :  { %1096 = vrot.lane.b32.xlu1 %v1095_v30, %s1772_s6 }
0x13e4   :  { %v1097_v32 = vpop.permute.xlu1 %1096 }
0x13e5   :  { %1508 = vmatmul.mubr.msk.f32.vlgmr.msra.gmra.mrb[10].mxu0 %vm199_vm3, %v1097_v32 }
0x14b8   :  { %v1166_v33 = vpop.f32.mrb[10].mxu0 }
0x14b9   :  { %v1167_v34 = vadd.f32 %v1166_v33, %v1952_v43  ;;  %v1509_v35 = vpop.f32.mrb[11].mxu0 }
0x14bb   :  { %v1171_v36 = vrot.slane %v1167_v34, 2 }
0x14bd   :  { %1178 = vrot.lane.b32.xlu0 %v1171_v36, %s1771_s4  ;;  %v1173_v37 = vadd.f32 %v1171_v36, %v1965_v50 }
0x14bf   :  { %v1174_v38 = vmul.f32 0.5, %v1173_v37 }
0x14c1   :  { %1633 = vtanh.f32 %v1174_v38 }
0x14cb   :  { %v1634_v39 = vpop.eup %1633 }
0x14cc   :  { %v1176_v40 = vadd.f32 1.0, %v1634_v39 }
0x14ce   :  { %v1177_v41 = vmul.f32 0.5, %v1176_v40 }
0x14d0   :  { %v1196_v56 = vmul.f32 %v1194_v55, %v1177_v41 }
0x152f   :  { %v1179_v42 = vpop.permute.xlu0 %1178 }
0x1530   :  { %v1181_v44 = vmul.f32 %v1179_v42, %v1177_v41 }
0x1532   :  { %1183 = vrot.lane.b32.xlu1 %v1181_v44, %s1771_s4 }
0x1536   :  { %1214 = vrot.lane.b32.xlu1 %v2023_v22, %s1772_s6  ;;  %v1188_v22 = vsub.f32 1.0, %v1177_v41 }
0x15a4   :  { %v1184_v45 = vpop.permute.xlu1 %1183 }
0x15a5   :  { %v1186_v43 = vadd.f32 %v1184_v45, %v1965_v50 }
0x15a7   :  { %1635 = vtanh.f32 %v1186_v43 }
0x15a8   :  { %v1215_v46 = vpop.permute.xlu1 %1214 }
0x15a9   :  { %1518 = vmatprep.mubr.msk.f32.mxu1 %vm199_vm3, %v1215_v46 }
0x15b1   :  { %v1636_v13 = vpop.eup %1635 }
0x15b2   :  { %1190 = vrot.lane.b32.xlu0 %v1636_v13, %s1772_s6 }
0x1624   :  { %v1191_v50 = vpop.permute.xlu0 %1190 }
0x1625   :  { %v1193_v0 = vmul.f32 %v1191_v50, %v1188_v22 }
0x1627   :  { %v1197_v14 = vadd.f32 %v1196_v56, %v1193_v0 }
0x1629   :  { %v1203_v17 = vsel %vm197_vm6, %v1202_v31, %v1197_v14 }
0x162a   :  { %1216 = vrot.lane.b32.xlu0 %v1203_v17, %s1772_s6 }
0x169c   :  { %v1217_v57 = vpop.permute.xlu0 %1216 }
0x169d   :  { %1519 = vmatmul.mubr.msk.f32.vlgmr.msra.gmra.mrb[10].mxu1 %vm199_vm3, %v1217_v57 }
0x1770   :  { %v1520_v60 = vpop.f32.mrb[10].mxu1 }
0x1771   :  { %v1294_v61 = vadd.f32 %v1520_v60, %v1211_v59  ;;  %v1288_v62 = vpop.f32.mrb[11].mxu1 }
0x1772   :  { %v1289_v63 = vadd.f32 %v1288_v62, %v1211_v59 }
0x1773   :  { %v1303_v1 = vmul.f32 1.442695, %v1294_v61  ;;  %1637 = vtanh.f32 %v1294_v61 }
0x1774   :  { %v1301_v2 = vmul.f32 1.442695, %v1289_v63  ;;  %1639 = vtanh.f32 %v1289_v63 }
0x1775   :  { %1641 = vpow2.f32 %v1303_v1 }
0x1776   :  { %1643 = vpow2.f32 %v1301_v2 }
0x177d   :  { %v1638_v4 = vpop.eup %1637 }
0x177e   :  { %v1640_v5 = vpop.eup %1639 }
0x177f   :  { %v1642_v6 = vpop.eup %1641 }
0x1780   :  { %v1644_v25 = vpop.eup %1643  ;;  %v1308_v7 = vsel %vm1300_vm7, %v1642_v6, %v1638_v4 }
0x1781   :  { %v1310_v27 = vsel %vm1299_vm8, %v1294_v61, %v1308_v7  ;;  %v1307_v8 = vsel %vm1300_vm7, %v1644_v25, %v1640_v5 }
0x1782   :  { %1312 = vst [vmem:[%s2097_s8 + $0x8] sm:$0xff] %v1310_v27  ;;  %v1309_v9 = vsel %vm1299_vm8, %v1289_v63, %v1307_v8 }
0x1783   :  { %1311 = vst [vmem:[%s2097_s8] sm:$0xff] %v1309_v9 }
0x1784   :  { %1317 = vsyncpa [#allocation3], 1 }
0x1785   :  { %1318 = vsyncpa [#allocation5], 1 }
0x1786   :  { %1319 = vsyncpa [#allocation8], 1 }

</bundles_post_ra>
